<compile_context>
chip_gen: v6e
topology: v6e:2x2x1
jax: 0.10.0
libtpu: 0.0.40
codegen_flags: <defaults>
</compile_context>

<pallas_src>
import functools

import jax
import jax.numpy as jnp
from jax.experimental import pallas as pl
from jax.experimental.pallas import tpu as pltpu


# ----------------------------- Pallas kernels ------------------------------

def _se_reduce_fc_kernel(x_ref, w1_ref, w2_ref, s_ref, *, inv_p):
    """Pass 1: global average pool (over F*H*W) + the two SE FCs.

    x_ref : (C, TP)  one pixel tile of one batch element (pixels on lanes)
    w1_ref: (Ch, C)  fc1 weight in PyTorch nn.Linear (out, in) layout
    w2_ref: (C, Ch)  fc2 weight in PyTorch nn.Linear (out, in) layout
    s_ref : (C, 1)   per-channel gate; doubles as the running-sum accumulator
                     (output block is VMEM-resident across the pixel axis)
    """
    p = pl.program_id(1)

    @pl.when(p == 0)
    def _init():
        s_ref[...] = jnp.zeros_like(s_ref)

    # Partial per-channel sums of this pixel tile (cross-lane reduce -> XLU).
    s_ref[...] += jnp.sum(x_ref[...], axis=-1, keepdims=True)

    @pl.when(p == pl.num_programs(1) - 1)
    def _finalize():
        mean = s_ref[...] * inv_p                                  # (C, 1)
        # Widen the column to a full 128-lane tile so both FCs are plain MXU
        # matmuls (no lane-sparse matvec); keep lane 0 of the result.
        mean_l = jnp.broadcast_to(mean, (mean.shape[0], 128))      # (C, 128)
        h = jnp.maximum(
            jnp.dot(w1_ref[...], mean_l,
                    preferred_element_type=jnp.float32), 0.0)      # (Ch, 128)
        s = jax.nn.sigmoid(
            jnp.dot(w2_ref[...], h,
                    preferred_element_type=jnp.float32))           # (C, 128)
        s_ref[...] = s[:, :1]                                      # (C, 1)


def _se_gate_kernel(x_ref, s_ref, o_ref):
    """Pass 2: lane-dense gating  o = x * s  (per-channel scalar broadcast)."""
    o_ref[...] = x_ref[...] * s_ref[...]


# ----------------------------- wrapper --------------------------------------

def _pick_pixel_tile(p_total, c, budget_bytes=2 * 1024 * 1024):
    """Largest multiple of 128 that divides p_total and keeps the f32 tile
    (c * tile * 4 bytes) under `budget_bytes`.  Falls back to one full tile
    if p_total is not a multiple of 128 (full-extent blocks are always legal)."""
    if p_total % 128 != 0:
        return p_total
    max_elems = max(budget_bytes // (4 * c), 128)
    best, t = 128, 128
    limit = min(p_total, int(max_elems))
    while t <= limit:
        if p_total % t == 0:
            best = t
        t += 128
    return best


def se_block3d(x, w1, w2, *, tile_p=None):
    """SE_Block3D forward:  x * sigmoid(fc2(relu(fc1(gap(x))))).

    x : (B, C, F, H, W) float32
    w1: (C//ratio, C)  fc1 weight (PyTorch (out, in) layout, no bias)
    w2: (C, C//ratio)  fc2 weight (PyTorch (out, in) layout, no bias)
    """
    b, c, f, h, w = x.shape
    ch = w1.shape[0]
    assert ch >= 1, "SE hidden width C // ratio must be >= 1"
    assert w1.shape == (ch, c) and w2.shape == (c, ch)

    p_total = f * h * w
    x3 = x.reshape(b, c, p_total)        # channels on sublanes, pixels on lanes

    if tile_p is None:
        tile_p = _pick_pixel_tile(p_total, c)
    assert p_total % tile_p == 0
    n_p = p_total // tile_p

    # Explicit VMEM budget (re-derived for v7x's 64 MiB physical VMEM; actual
    # usage is ~4 double-buffered tiles of <= 2 MiB each, far under the limit).
    vmem_limit = 32 * 1024 * 1024

    x_spec = pl.BlockSpec((None, c, tile_p), lambda i, j: (i, 0, j))
    s_spec = pl.BlockSpec((None, c, 1), lambda i, j: (i, 0, 0))

    # ---- pass 1: GAP + FCs -> per-(batch, channel) gate --------------------
    scale = pl.pallas_call(
        functools.partial(_se_reduce_fc_kernel, inv_p=1.0 / p_total),
        grid=(b, n_p),
        in_specs=[x_spec,
                  pl.BlockSpec((ch, c), lambda i, j: (0, 0)),
                  pl.BlockSpec((c, ch), lambda i, j: (0, 0))],
        out_specs=s_spec,
        out_shape=jax.ShapeDtypeStruct((b, c, 1), jnp.float32),
        compiler_params=pltpu.CompilerParams(
            dimension_semantics=("parallel", "arbitrary"),
            vmem_limit_bytes=vmem_limit),
    )(x3, w1, w2)

    # ---- pass 2: lane-dense gating -----------------------------------------
    out = pl.pallas_call(
        _se_gate_kernel,
        grid=(b, n_p),
        in_specs=[x_spec, s_spec],
        out_specs=x_spec,
        out_shape=jax.ShapeDtypeStruct((b, c, p_total), x.dtype),
        compiler_params=pltpu.CompilerParams(
            dimension_semantics=("parallel", "parallel"),
            vmem_limit_bytes=vmem_limit),
    )(x3, scale)

    return out.reshape(b, c, f, h, w)


# ----------------------------- main ------------------------------------------

if __name__ == "__main__":
    B, C, RATIO = 2, 64, 16
    F, H, W = 4, 16, 16
    CH = C // RATIO

    key = jax.random.PRNGKey(0)
    kx, k1, k2 = jax.random.split(key, 3)
    x = jax.random.normal(kx, (B, C, F, H, W), jnp.float32)
    w1 = 0.1 * jax.random.normal(k1, (CH, C), jnp.float32)   # nn.Linear (out, in)
    w2 = 0.1 * jax.random.normal(k2, (C, CH), jnp.float32)

    # tile_p=256 -> 4 pixel tiles per batch element, exercising the
    # multi-tile accumulation path of pass 1.
    fn = jax.jit(functools.partial(se_block3d, tile_p=256))
    out = fn(x, w1, w2)
    jax.block_until_ready(out)

    # Pure-JAX reference (matches the PyTorch forward).
    y = jnp.mean(x.reshape(B, C, -1), axis=-1)                       # gap
    s = jax.nn.sigmoid(jnp.maximum(y @ w1.T, 0.0) @ w2.T)            # fc
    ref = x * s[:, :, None, None, None]

    assert out.shape == x.shape and out.dtype == x.dtype
    assert jnp.allclose(out, ref, rtol=1e-5, atol=1e-5)
    print("KERNEL_OK")
</pallas_src>

<mosaic_0001>
module attributes {stable_mosaic.version = 11 : i64} {
  func.func @_se_gate_kernel(%arg0: i32, %arg1: i32, %arg2: memref<1x64x256xf32, #tpu.memory_space<vmem>>, %arg3: memref<1x64x1xf32, #tpu.memory_space<vmem>>, %arg4: memref<1x64x256xf32, #tpu.memory_space<vmem>>) attributes {dimension_semantics = [#tpu.dimension_semantics<parallel>, #tpu.dimension_semantics<parallel>], iteration_bounds = array<i64: 2, 4>, scalar_prefetch = 0 : i64, scratch_operands = 0 : i64, tpu.core_type = #tpu.core_type<tc>, window_params = [{transform_indices = @transform_0, window_bounds = array<i64: 1, 64, 256>}, {transform_indices = @transform_1, window_bounds = array<i64: 1, 64, 1>}, {transform_indices = @transform_2, window_bounds = array<i64: 1, 64, 256>}]} {
    %c0 = arith.constant 0 : index
    %c0_0 = arith.constant 0 : index
    %c0_1 = arith.constant 0 : index
    %0 = vector.load %arg2[%c0, %c0_0, %c0_1] : memref<1x64x256xf32, #tpu.memory_space<vmem>>, vector<1x64x256xf32>
    %1 = vector.shape_cast %0 : vector<1x64x256xf32> to vector<64x256xf32>
    %c0_2 = arith.constant 0 : index
    %c0_3 = arith.constant 0 : index
    %c0_4 = arith.constant 0 : index
    %2 = vector.load %arg3[%c0_2, %c0_3, %c0_4] : memref<1x64x1xf32, #tpu.memory_space<vmem>>, vector<1x64x1xf32>
    %3 = vector.shape_cast %2 : vector<1x64x1xf32> to vector<64x1xf32>
    %4 = vector.broadcast %3 : vector<64x1xf32> to vector<64x256xf32>
    %5 = arith.mulf %1, %4 : vector<64x256xf32>
    %c0_5 = arith.constant 0 : index
    %c0_6 = arith.constant 0 : index
    %c0_7 = arith.constant 0 : index
    %6 = vector.load %arg4[%c0_5, %c0_6, %c0_7] : memref<1x64x256xf32, #tpu.memory_space<vmem>>, vector<1x64x256xf32>
    %7 = vector.shape_cast %6 : vector<1x64x256xf32> to vector<64x256xf32>
    %8 = vector.shape_cast %5 : vector<64x256xf32> to vector<1x64x256xf32>
    tpu.vector_store %arg4[%c0_5, %c0_6, %c0_7], %8 {strides = array<i32>} : memref<1x64x256xf32, #tpu.memory_space<vmem>>, vector<1x64x256xf32>,
    return
  }
  func.func @transform_0(%arg0: i32, %arg1: i32) -> (i32, i32, i32) {
    %c0_i32 = arith.constant 0 : i32
    %c0_i32_0 = arith.constant 0 : i32
    return %arg0, %c0_i32, %arg1 : i32, i32, i32
  }
  func.func @transform_1(%arg0: i32, %arg1: i32) -> (i32, i32, i32) {
    %c0_i32 = arith.constant 0 : i32
    %c0_i32_0 = arith.constant 0 : i32
    %c0_i32_1 = arith.constant 0 : i32
    return %arg0, %c0_i32, %c0_i32_0 : i32, i32, i32
  }
  func.func @transform_2(%arg0: i32, %arg1: i32) -> (i32, i32, i32) {
    %c0_i32 = arith.constant 0 : i32
    %c0_i32_0 = arith.constant 0 : i32
    return %arg0, %c0_i32, %arg1 : i32, i32, i32
  }
}

module attributes {stable_mosaic.version = 11 : i64} {
  func.func @_se_reduce_fc_kernel(%arg0: i32, %arg1: i32, %arg2: memref<1x64x256xf32, #tpu.memory_space<vmem>>, %arg3: memref<4x64xf32, #tpu.memory_space<vmem>>, %arg4: memref<64x4xf32, #tpu.memory_space<vmem>>, %arg5: memref<1x64x1xf32, #tpu.memory_space<vmem>>) attributes {dimension_semantics = [#tpu.dimension_semantics<parallel>, #tpu.dimension_semantics<arbitrary>], iteration_bounds = array<i64: 2, 4>, scalar_prefetch = 0 : i64, scratch_operands = 0 : i64, tpu.core_type = #tpu.core_type<tc>, window_params = [{transform_indices = @transform_0, window_bounds = array<i64: 1, 64, 256>}, {pipeline_mode = #tpu.pipeline_mode<synchronous>, transform_indices = @transform_1, window_bounds = array<i64: 4, 64>}, {pipeline_mode = #tpu.pipeline_mode<synchronous>, transform_indices = @transform_2, window_bounds = array<i64: 64, 4>}, {transform_indices = @transform_3, window_bounds = array<i64: 1, 64, 1>}]} {
    %c0_i32 = arith.constant 0 : i32
    %0 = arith.cmpi eq, %arg1, %c0_i32 : i32
    %1 = arith.extui %0 : i1 to i32
    %c0_i32_0 = arith.constant 0 : i32
    %2 = arith.cmpi ne, %1, %c0_i32_0 : i32
    scf.if %2 {
      %cst_10 = arith.constant 0.000000e+00 : f32
      %16 = vector.broadcast %cst_10 : f32 to vector<64x1xf32>
      %c0_11 = arith.constant 0 : index
      %c0_12 = arith.constant 0 : index
      %c0_13 = arith.constant 0 : index
      %17 = vector.load %arg5[%c0_11, %c0_12, %c0_13] : memref<1x64x1xf32, #tpu.memory_space<vmem>>, vector<1x64x1xf32>
      %18 = vector.shape_cast %17 : vector<1x64x1xf32> to vector<64x1xf32>
      %19 = vector.shape_cast %16 : vector<64x1xf32> to vector<1x64x1xf32>
      tpu.vector_store %arg5[%c0_11, %c0_12, %c0_13], %19 {strides = array<i32>} : memref<1x64x1xf32, #tpu.memory_space<vmem>>, vector<1x64x1xf32>,
    } else {
    }
    %c0 = arith.constant 0 : index
    %c0_1 = arith.constant 0 : index
    %c0_2 = arith.constant 0 : index
    %3 = vector.load %arg5[%c0, %c0_1, %c0_2] : memref<1x64x1xf32, #tpu.memory_space<vmem>>, vector<1x64x1xf32>
    %4 = vector.shape_cast %3 : vector<1x64x1xf32> to vector<64x1xf32>
    %c0_3 = arith.constant 0 : index
    %c0_4 = arith.constant 0 : index
    %c0_5 = arith.constant 0 : index
    %5 = vector.load %arg2[%c0_3, %c0_4, %c0_5] : memref<1x64x256xf32, #tpu.memory_space<vmem>>, vector<1x64x256xf32>
    %6 = vector.shape_cast %5 : vector<1x64x256xf32> to vector<64x256xf32>
    %cst = arith.constant dense<0.000000e+00> : vector<64xf32>
    %7 = vector.multi_reduction <add>, %6, %cst [1] : vector<64x256xf32> to vector<64xf32>
    %8 = vector.shape_cast %7 : vector<64xf32> to vector<64x1xf32>
    %9 = arith.addf %4, %8 : vector<64x1xf32>
    %c0_6 = arith.constant 0 : index
    %c0_7 = arith.constant 0 : index
    %c0_8 = arith.constant 0 : index
    %10 = vector.load %arg5[%c0_6, %c0_7, %c0_8] : memref<1x64x1xf32, #tpu.memory_space<vmem>>, vector<1x64x1xf32>
    %11 = vector.shape_cast %10 : vector<1x64x1xf32> to vector<64x1xf32>
    %12 = vector.shape_cast %9 : vector<64x1xf32> to vector<1x64x1xf32>
    tpu.vector_store %arg5[%c0_6, %c0_7, %c0_8], %12 {strides = array<i32>} : memref<1x64x1xf32, #tpu.memory_space<vmem>>, vector<1x64x1xf32>,
    %c3_i32 = arith.constant 3 : i32
    %13 = arith.cmpi eq, %arg1, %c3_i32 : i32
    %14 = arith.extui %13 : i1 to i32
    %c0_i32_9 = arith.constant 0 : i32
    %15 = arith.cmpi ne, %14, %c0_i32_9 : i32
    scf.if %15 {
      %c0_10 = arith.constant 0 : index
      %c0_11 = arith.constant 0 : index
      %c0_12 = arith.constant 0 : index
      %16 = vector.load %arg5[%c0_10, %c0_11, %c0_12] : memref<1x64x1xf32, #tpu.memory_space<vmem>>, vector<1x64x1xf32>
      %17 = vector.shape_cast %16 : vector<1x64x1xf32> to vector<64x1xf32>
      %cst_13 = arith.constant 9.765625E-4 : f32
      %18 = vector.broadcast %cst_13 : f32 to vector<64x1xf32>
      %19 = arith.mulf %17, %18 : vector<64x1xf32>
      %20 = vector.shape_cast %19 : vector<64x1xf32> to vector<64x1xf32>
      %21 = vector.broadcast %20 : vector<64x1xf32> to vector<64x128xf32>
      %c0_14 = arith.constant 0 : index
      %c0_15 = arith.constant 0 : index
      %22 = vector.load %arg3[%c0_14, %c0_15] : memref<4x64xf32, #tpu.memory_space<vmem>>, vector<4x64xf32>
      %cst_16 = arith.constant dense<0.000000e+00> : vector<4x128xf32>
      %23 = tpu.matmul %22, %21, %cst_16 {dimension_numbers = #tpu.dot_dimension_numbers<[1], [0], [0], [1], [0, 0, 1, 1], [], []>} : vector<4x64xf32>, vector<64x128xf32>, vector<4x128xf32> -> vector<4x128xf32>
      %cst_17 = arith.constant 0.000000e+00 : f32
      %24 = vector.broadcast %cst_17 : f32 to vector<4x128xf32>
      %25 = arith.maximumf %23, %24 : vector<4x128xf32>
      %c0_18 = arith.constant 0 : index
      %c0_19 = arith.constant 0 : index
      %26 = vector.load %arg4[%c0_18, %c0_19] : memref<64x4xf32, #tpu.memory_space<vmem>>, vector<64x4xf32>
      %cst_20 = arith.constant dense<0.000000e+00> : vector<64x128xf32>
      %27 = tpu.matmul %26, %25, %cst_20 {dimension_numbers = #tpu.dot_dimension_numbers<[1], [0], [0], [1], [0, 0, 1, 1], [], []>} : vector<64x4xf32>, vector<4x128xf32>, vector<64x128xf32> -> vector<64x128xf32>
      %28 = arith.negf %27 : vector<64x128xf32>
      %29 = math.exp %28 : vector<64x128xf32>
      %cst_21 = arith.constant 1.000000e+00 : f32
      %30 = vector.broadcast %cst_21 : f32 to vector<64x128xf32>
      %31 = arith.addf %30, %29 : vector<64x128xf32>
      %32 = arith.divf %30, %31 : vector<64x128xf32>
      %33 = vector.extract_strided_slice %32 {offsets = [0, 0], sizes = [64, 1], strides = [1, 1]} : vector<64x128xf32> to vector<64x1xf32>
      %c0_22 = arith.constant 0 : index
      %c0_23 = arith.constant 0 : index
      %c0_24 = arith.constant 0 : index
      %34 = vector.load %arg5[%c0_22, %c0_23, %c0_24] : memref<1x64x1xf32, #tpu.memory_space<vmem>>, vector<1x64x1xf32>
      %35 = vector.shape_cast %34 : vector<1x64x1xf32> to vector<64x1xf32>
      %36 = vector.shape_cast %33 : vector<64x1xf32> to vector<1x64x1xf32>
      tpu.vector_store %arg5[%c0_22, %c0_23, %c0_24], %36 {strides = array<i32>} : memref<1x64x1xf32, #tpu.memory_space<vmem>>, vector<1x64x1xf32>,
    } else {
    }
    return
  }
  func.func @transform_0(%arg0: i32, %arg1: i32) -> (i32, i32, i32) {
    %c0_i32 = arith.constant 0 : i32
    %c0_i32_0 = arith.constant 0 : i32
    return %arg0, %c0_i32, %arg1 : i32, i32, i32
  }
  func.func @transform_1(%arg0: i32, %arg1: i32) -> (i32, i32) {
    %c0_i32 = arith.constant 0 : i32
    %c0_i32_0 = arith.constant 0 : i32
    %c0_i32_1 = arith.constant 0 : i32
    return %c0_i32, %c0_i32_0 : i32, i32
  }
  func.func @transform_2(%arg0: i32, %arg1: i32) -> (i32, i32) {
    %c0_i32 = arith.constant 0 : i32
    %c0_i32_0 = arith.constant 0 : i32
    %c0_i32_1 = arith.constant 0 : i32
    return %c0_i32, %c0_i32_0 : i32, i32
  }
  func.func @transform_3(%arg0: i32, %arg1: i32) -> (i32, i32, i32) {
    %c0_i32 = arith.constant 0 : i32
    %c0_i32_0 = arith.constant 0 : i32
    %c0_i32_1 = arith.constant 0 : i32
    return %arg0, %c0_i32, %c0_i32_0 : i32, i32, i32
  }
}

</mosaic_0001>

<bundles_post_ra>
// kernel: se_block3d.3
= control target key start
LH: loop header
LB: loop body
LE: loop exit
PB: predicated region body
PF: predicated region fallthrough
CT: control target
= control target key end

     0   :  { %s620_s9 = smov 0   ;;  %s622_s10 = smov 0   ;;  %s791_s0 = inlined_call_operand.vmem [shape: f32[2,64,1024], index: 0, kind: input, shape index: {}]   ;;  %s792_s1 = inlined_call_operand.vmem [shape: f32[2,64,1], index: 1, kind: input, shape index: {}]   ;;  %s793_s2 = inlined_call_operand.vmem [shape: f32[2,64,1024], index: 2, kind: output, shape index: {}]  }
   0x1   :  { %s624_s11 = smov 0   ;;  %s626_s12 = smov 0  }
   0x2   :  { %s628_s13 = smov 0   ;;  %s630_s14 = smov 0  }
   0x3   :  { %s632_s15 = smov 0  }
   0x4 LB: > { %s21_s16 = sadd.s32 1, %s594_s13  ;;  %s24_s17 = sadd.s32 1, %s598_s14  ;;  %s602_s15 = sphi %s632_s15, %s12_s15   ;;  %s598_s14 = sphi %s630_s14, %s800_s14   ;;  %s594_s13 = sphi %s628_s13, %s799_s13   ;;  %s590_s12 = sphi %s626_s12, %s798_s12   ;;  %s586_s11 = sphi %s624_s11, %s797_s11   ;;  %s582_s10 = sphi %s622_s10, %s796_s10   ;;  %s578_s9 = sphi %s620_s9, %s795_s9  }
   0x5   : > { %p22_p0 = scmp.ge.s32.totalorder %s21_s16, 4  ;;  %s469_s18 = sadd.s32 4294967295, %s602_s15  }
   0x6   : > { %p40_p1 = scmp.ne.s32.totalorder %s582_s10, %s578_s9  ;;  %p41_p2 = scmp.eq.s32.totalorder %s602_s15, 0 }
   0x7   : > { %s802_s16 = smov (%p22_p0, %s21_s16), 0  ;;  %s804_s17 = smov (!%p22_p0, %s24_s17), %s598_s14 }
   0x8   : > { %p26_p3 = scmp.ge.s32.totalorder %s804_s17, 2  ;;  %p98_p4 = scmp.eq.s32.totalorder %s469_s18, 7 }
   0x9   : > { %s29_s19 = ssub.s32 %s594_s13, %s802_s16  ;;  %p42_p5 = por %p41_p2, %p40_p1 }
   0xa   : > { %s806_s17 = smov (%p26_p3, %s804_s17), 0  ;;  %p668_p6 = por %p98_p4, %p40_p1 }
   0xb   : > { %s28_s21 = ssub.s32 %s598_s14, %s806_s17  ;;  %s33_s23 = sadd.s32 1, %s582_s10 }
   0xc   : > { %s30_s22 = sor.u32 %s29_s19, %s28_s21  ;;  %p472_p8 = scmp.ge.s32.totalorder %s602_s15, 8 }
   0xd   : > { %p31_p7 = scmp.eq.s32.totalorder %s30_s22, 0 }
   0xe   : > { %120 = sbr.rel (%p472_p8) target bundleno = 34 (0x22), region = 16 }
   0xf   : > { %s676_s24 = scalar_select %p31_p7, %s582_s10, %s33_s23  }
  0x13   : > { %123 = sbr.rel (!%p42_p5) target bundleno = 34 (0x22), region = 20  ;;  %s125_s25 = sand.u32 (%p42_p5), 1, %s582_s10  }
  0x14   : > { %s474_s26 = sshll.u32 (%p42_p5), %s594_s13, 1  ;;  %s473_s27 = sshll.u32 (%p42_p5), %s125_s25, 7 }
  0x15   : > { %s475_s28 = sshll.u32 (%p42_p5), %s598_s14, 6  ;;  %s127_s6 = scalar_lea.vmem (%p42_p5), [#allocation2], %s473_s27 }
  0x16   : > { %s130_s29 = sadd.s32 (%p42_p5), %s475_s28, %s474_s26 }
  0x17   : > { %s476_s30 = sshll.u32 (%p42_p5), %s130_s29, 3 }
  0x18   : > { %s685_s5 = scalar_lea.vmem %s791_s0, %s476_s30 }
  0x19   : > { %v145_v0 = vld [vmem:[%s685_s5] sm:$0xff]  ;;  %v147_v1 = vld [vmem:[%s685_s5 + $0x8] sm:$0xff] }
  0x1a   : > { %v149_v2 = vld [vmem:[%s685_s5 + $0x40] sm:$0xff]  ;;  %146 = vst [vmem:[%s127_s6] sm:$0xff] %v145_v0  ;;  %148 = vst [vmem:[%s127_s6 + $0x8] sm:$0xff] %v147_v1  ;;  %v151_v3 = vld [vmem:[%s685_s5 + $0x48] sm:$0xff] }
  0x1b   : > { %150 = vst [vmem:[%s127_s6 + $0x10] sm:$0xff] %v149_v2  ;;  %v153_v4 = vld [vmem:[%s685_s5 + $0x80] sm:$0xff]  ;;  %v155_v5 = vld [vmem:[%s685_s5 + $0x88] sm:$0xff]  ;;  %152 = vst [vmem:[%s127_s6 + $0x18] sm:$0xff] %v151_v3 }
  0x1c   : > { %154 = vst [vmem:[%s127_s6 + $0x20] sm:$0xff] %v153_v4  ;;  %156 = vst [vmem:[%s127_s6 + $0x28] sm:$0xff] %v155_v5  ;;  %v157_v6 = vld [vmem:[%s685_s5 + $0xc0] sm:$0xff]  ;;  %v159_v7 = vld [vmem:[%s685_s5 + $0xc8] sm:$0xff] }
  0x1d   : > { %v161_v8 = vld [vmem:[%s685_s5 + $0x100] sm:$0xff]  ;;  %158 = vst [vmem:[%s127_s6 + $0x30] sm:$0xff] %v157_v6  ;;  %160 = vst [vmem:[%s127_s6 + $0x38] sm:$0xff] %v159_v7  ;;  %v163_v9 = vld [vmem:[%s685_s5 + $0x108] sm:$0xff] }
  0x1e   : > { %162 = vst [vmem:[%s127_s6 + $0x40] sm:$0xff] %v161_v8  ;;  %v165_v10 = vld [vmem:[%s685_s5 + $0x140] sm:$0xff]  ;;  %v167_v11 = vld [vmem:[%s685_s5 + $0x148] sm:$0xff]  ;;  %164 = vst [vmem:[%s127_s6 + $0x48] sm:$0xff] %v163_v9 }
  0x1f   : > { %166 = vst [vmem:[%s127_s6 + $0x50] sm:$0xff] %v165_v10  ;;  %168 = vst [vmem:[%s127_s6 + $0x58] sm:$0xff] %v167_v11  ;;  %v169_v12 = vld [vmem:[%s685_s5 + $0x180] sm:$0xff]  ;;  %v171_v13 = vld [vmem:[%s685_s5 + $0x188] sm:$0xff] }
  0x20   : > { %v173_v14 = vld [vmem:[%s685_s5 + $0x1c0] sm:$0xff]  ;;  %170 = vst [vmem:[%s127_s6 + $0x60] sm:$0xff] %v169_v12  ;;  %172 = vst [vmem:[%s127_s6 + $0x68] sm:$0xff] %v171_v13  ;;  %v175_v15 = vld [vmem:[%s685_s5 + $0x1c8] sm:$0xff] }
  0x21   : > { %174 = vst [vmem:[%s127_s6 + $0x70] sm:$0xff] %v173_v14  ;;  %176 = vst [vmem:[%s127_s6 + $0x78] sm:$0xff] %v175_v15 }
  0x22 PF: > { %p477_p9 = scmp.ge.s32.totalorder %s602_s15, 1  ;;  %p189_p10 = scmp.lt.s32.totalorder %s602_s15, 9 }
  0x24   : > { %p190_p11 = pnand %p477_p9, %p189_p10 }
  0x25   : > { %p222_p12 = scmp.lt.s32.totalorder (!%p190_p11), %s590_s12, 1  ;;  %s196_s22 = sand.u32 (!%p190_p11), 1, %s578_s9  }
  0x26   : > { %193 = sbr.rel (%p190_p11) target bundleno = 196 (0xc4), region = 47  ;;  %s478_s23 = sshll.u32 (!%p190_p11), %s196_s22, 7 }
  0x27   : > { %s711_s25 = scalar_lea.vmem (!%p190_p11), [#allocation2], %s478_s23  ;;  %s721_s9 = scalar_lea.vmem (!%p190_p11), [#allocation3], %s478_s23 }
  0x2b   : > { %v604_v16 = vmov 0   ;;  %s223_s7 = scalar_select %p222_p12, %s590_s12, 1  ;;  %v232_v25 = vld [vmem:[%s711_s25 + $0x20] sm:$0xff]  ;;  %v233_v26 = vld [vmem:[%s711_s25 + $0x28] sm:$0xff]  ;;  %v234_v35 = vld [vmem:[%s711_s25 + $0x30] sm:$0xff] }
  0x2c   : > { %547 = vset.pattern.permute.xlu1 %v604_v16  ;;  %546 = vset.pattern.permute.xlu0 %v604_v16  ;;  %v228_v27 = vld [vmem:[%s711_s25] sm:$0xff]  ;;  %v229_v28 = vld [vmem:[%s711_s25 + $0x8] sm:$0xff]  ;;  %v235_v36 = vld [vmem:[%s711_s25 + $0x38] sm:$0xff]  ;;  %s483_s26 = sshll.u32 (%p668_p6), %s586_s11, 1  ;;  %s484_s27 = sshll.u32 (%p668_p6), %s590_s12, 6 }
  0x2d   : > { %s488_s8 = sshll.u32 %s223_s7, 6  ;;  %v230_v37 = vld [vmem:[%s711_s25 + $0x10] sm:$0xff]  ;;  %v231_v38 = vld [vmem:[%s711_s25 + $0x18] sm:$0xff]  ;;  %v236_v47 = vld [vmem:[%s711_s25 + $0x40] sm:$0xff]  ;;  %s333_s20 = sadd.s32 (%p668_p6), %s484_s27, %s483_s26 }
  0x2e   : > { %s226_s21 = scalar_lea.vmem %s792_s1, %s488_s8  ;;  %v238_v45 = vld [vmem:[%s711_s25 + $0x50] sm:$0xff]  ;;  %v239_v46 = vld [vmem:[%s711_s25 + $0x58] sm:$0xff]  ;;  %v237_v48 = vld [vmem:[%s711_s25 + $0x48] sm:$0xff]  ;;  %s485_s28 = sshll.u32 (%p668_p6), %s333_s20, 3 }
  0x2f   : > { %v246_v17 = vld [vmem:[%s226_s21 + $0x10] sm:$0xff]  ;;  %v244_v18 = vld [vmem:[%s226_s21] sm:$0xff]  ;;  %v247_v19 = vld [vmem:[%s226_s21 + $0x18] sm:$0xff]  ;;  %s335_s3 = scalar_lea.vmem (%p668_p6), %s793_s2, %s485_s28 }
  0x30   : > { %264 = vperm.xlu1 %547, %v246_v17   ;;  %254 = vperm.xlu0 %546, %v244_v18   ;;  %v245_v20 = vld [vmem:[%s226_s21 + $0x8] sm:$0xff]  ;;  %v248_v22 = vld [vmem:[%s226_s21 + $0x20] sm:$0xff]  ;;  %v251_v23 = vld [vmem:[%s226_s21 + $0x38] sm:$0xff] }
  0x31   : > { %v249_v21 = vld [vmem:[%s226_s21 + $0x28] sm:$0xff]  ;;  %v250_v24 = vld [vmem:[%s226_s21 + $0x30] sm:$0xff]  ;;  %v243_v56 = vld [vmem:[%s711_s25 + $0x78] sm:$0xff] }
  0x32   : > { %v242_v55 = vld [vmem:[%s711_s25 + $0x70] sm:$0xff]  ;;  %v240_v57 = vld [vmem:[%s711_s25 + $0x60] sm:$0xff]  ;;  %v241_v58 = vld [vmem:[%s711_s25 + $0x68] sm:$0xff] }
  0x34   : > { %269 = vperm.xlu1 %547, %v247_v19   ;;  %259 = vperm.xlu0 %546, %v245_v20  }
  0x38   : > { %279 = vperm.xlu1 %547, %v249_v21   ;;  %274 = vperm.xlu0 %546, %v248_v22  }
  0x3c   : > { %289 = vperm.xlu1 %547, %v251_v23   ;;  %284 = vperm.xlu0 %546, %v250_v24  }
  0xab   : > { %v265_v29 = vpop.permute.xlu1 %264  ;;  %v255_v30 = vpop.permute.xlu0 %254 }
  0xac   : > { %v296_v31 = vmul.f32 %v265_v29, %v232_v25  ;;  %v297_v32 = vmul.f32 %v265_v29, %v233_v26  ;;  %v292_v33 = vmul.f32 %v255_v30, %v228_v27  ;;  %v293_v34 = vmul.f32 %v255_v30, %v229_v28 }
  0xae   : > { %312 = vst [vmem:[%s721_s9 + $0x20] sm:$0xff] %v296_v31  ;;  %313 = vst [vmem:[%s721_s9 + $0x28] sm:$0xff] %v297_v32 }
  0xaf   : > { %308 = vst [vmem:[%s721_s9] sm:$0xff] %v292_v33  ;;  %309 = vst [vmem:[%s721_s9 + $0x8] sm:$0xff] %v293_v34  ;;  %v270_v39 = vpop.permute.xlu1 %269  ;;  %v260_v40 = vpop.permute.xlu0 %259 }
  0xb0   : > { %v298_v41 = vmul.f32 %v270_v39, %v234_v35  ;;  %v299_v42 = vmul.f32 %v270_v39, %v235_v36  ;;  %v294_v43 = vmul.f32 %v260_v40, %v230_v37  ;;  %v295_v44 = vmul.f32 %v260_v40, %v231_v38 }
  0xb2   : > { %314 = vst [vmem:[%s721_s9 + $0x30] sm:$0xff] %v298_v41  ;;  %315 = vst [vmem:[%s721_s9 + $0x38] sm:$0xff] %v299_v42 }
  0xb3   : > { %310 = vst [vmem:[%s721_s9 + $0x10] sm:$0xff] %v294_v43  ;;  %311 = vst [vmem:[%s721_s9 + $0x18] sm:$0xff] %v295_v44  ;;  %v280_v49 = vpop.permute.xlu1 %279  ;;  %v275_v50 = vpop.permute.xlu0 %274 }
  0xb4   : > { %v302_v51 = vmul.f32 %v280_v49, %v238_v45  ;;  %v303_v52 = vmul.f32 %v280_v49, %v239_v46  ;;  %v300_v53 = vmul.f32 %v275_v50, %v236_v47  ;;  %v301_v54 = vmul.f32 %v275_v50, %v237_v48 }
  0xb5   : > { %v356_v5 = vld [vmem:[%s721_s9 + $0x20] sm:$0xff] (%p668_p6)  ;;  %v358_v6 = vld [vmem:[%s721_s9 + $0x28] sm:$0xff] (%p668_p6) }
  0xb6   : > { %318 = vst [vmem:[%s721_s9 + $0x50] sm:$0xff] %v302_v51  ;;  %319 = vst [vmem:[%s721_s9 + $0x58] sm:$0xff] %v303_v52  ;;  %v348_v1 = vld [vmem:[%s721_s9] sm:$0xff] (%p668_p6)  ;;  %v350_v2 = vld [vmem:[%s721_s9 + $0x8] sm:$0xff] (%p668_p6) }
  0xb7   : > { %316 = vst [vmem:[%s721_s9 + $0x40] sm:$0xff] %v300_v53  ;;  %317 = vst [vmem:[%s721_s9 + $0x48] sm:$0xff] %v301_v54  ;;  %v290_v59 = vpop.permute.xlu1 %289  ;;  %v285_v60 = vpop.permute.xlu0 %284  ;;  %330 = sbr.rel (!%p668_p6) target bundleno = 196 (0xc4), region = 55 }
  0xb8   : > { %v306_v61 = vmul.f32 %v290_v59, %v242_v55  ;;  %v307_v62 = vmul.f32 %v290_v59, %v243_v56  ;;  %v304_v63 = vmul.f32 %v285_v60, %v240_v57  ;;  %v305_v0 = vmul.f32 %v285_v60, %v241_v58  ;;  %349 = vst [vmem:[%s335_s3] sm:$0xff] (%p668_p6), %v348_v1 }
  0xb9   : > { %v360_v7 = vld [vmem:[%s721_s9 + $0x30] sm:$0xff] (%p668_p6)  ;;  %v362_v8 = vld [vmem:[%s721_s9 + $0x38] sm:$0xff] (%p668_p6)  ;;  %351 = vst [vmem:[%s335_s3 + $0x8] sm:$0xff] (%p668_p6), %v350_v2  ;;  %357 = vst [vmem:[%s335_s3 + $0x80] sm:$0xff] (%p668_p6), %v356_v5 }
  0xba   : > { %322 = vst [vmem:[%s721_s9 + $0x70] sm:$0xff] %v306_v61  ;;  %323 = vst [vmem:[%s721_s9 + $0x78] sm:$0xff] %v307_v62  ;;  %v352_v3 = vld [vmem:[%s721_s9 + $0x10] sm:$0xff] (%p668_p6)  ;;  %v354_v4 = vld [vmem:[%s721_s9 + $0x18] sm:$0xff] (%p668_p6) }
  0xbb   : > { %320 = vst [vmem:[%s721_s9 + $0x60] sm:$0xff] %v304_v63  ;;  %321 = vst [vmem:[%s721_s9 + $0x68] sm:$0xff] %v305_v0 }
  0xbc   : > { %353 = vst [vmem:[%s335_s3 + $0x40] sm:$0xff] %v352_v3  ;;  %355 = vst [vmem:[%s335_s3 + $0x48] sm:$0xff] %v354_v4 }
  0xbd   : > { %v368_v11 = vld [vmem:[%s721_s9 + $0x50] sm:$0xff]  ;;  %v370_v12 = vld [vmem:[%s721_s9 + $0x58] sm:$0xff]  ;;  %359 = vst [vmem:[%s335_s3 + $0x88] sm:$0xff] %v358_v6  ;;  %361 = vst [vmem:[%s335_s3 + $0xc0] sm:$0xff] %v360_v7 }
  0xbe   : > { %v364_v9 = vld [vmem:[%s721_s9 + $0x40] sm:$0xff]  ;;  %v366_v10 = vld [vmem:[%s721_s9 + $0x48] sm:$0xff]  ;;  %363 = vst [vmem:[%s335_s3 + $0xc8] sm:$0xff] %v362_v8  ;;  %369 = vst [vmem:[%s335_s3 + $0x140] sm:$0xff] %v368_v11 }
  0xbf   : > { %365 = vst [vmem:[%s335_s3 + $0x100] sm:$0xff] %v364_v9  ;;  %367 = vst [vmem:[%s335_s3 + $0x108] sm:$0xff] %v366_v10 }
  0xc0   : > { %371 = vst [vmem:[%s335_s3 + $0x148] sm:$0xff] %v370_v12 }
  0xc1   : > { %v376_v15 = vld [vmem:[%s721_s9 + $0x70] sm:$0xff]  ;;  %v378_v16 = vld [vmem:[%s721_s9 + $0x78] sm:$0xff] }
  0xc2   : > { %v372_v13 = vld [vmem:[%s721_s9 + $0x60] sm:$0xff]  ;;  %v374_v14 = vld [vmem:[%s721_s9 + $0x68] sm:$0xff]  ;;  %377 = vst [vmem:[%s335_s3 + $0x1c0] sm:$0xff] %v376_v15  ;;  %379 = vst [vmem:[%s335_s3 + $0x1c8] sm:$0xff] %v378_v16 }
  0xc3   : > { %373 = vst [vmem:[%s335_s3 + $0x180] sm:$0xff] %v372_v13  ;;  %375 = vst [vmem:[%s335_s3 + $0x188] sm:$0xff] %v374_v14 }
  0xc4 PF: > { %s12_s15 = sadd.s32 1, %s602_s15   ;;  %s795_s9 = smov %s582_s10 }
  0xc5   : > { %p9_p13 = scmp.ge.s32.totalorder %s12_s15, 10   ;;  %s796_s10 = smov %s676_s24 }
  0xc6   : > { %s797_s11 = smov %s594_s13  ;;  %s798_s12 = smov %s598_s14 }
  0xc7   : > { %s799_s13 = smov %s802_s16  ;;  %s800_s14 = smov %s806_s17 }
  0xc8   :  { %11 = sbr.rel (!%p9_p13) target bundleno = 4 (0x4), region = 112 }

// kernel: se_block3d.2
= control target key start
LH: loop header
LB: loop body
LE: loop exit
PB: predicated region body
PF: predicated region fallthrough
CT: control target
= control target key end

     0   :  { %s985_s12 = smov 0   ;;  %s987_s13 = smov 0   ;;  %s1205_s0 = inlined_call_operand.vmem [shape: f32[2,64,1024], index: 0, kind: input, shape index: {}]   ;;  %s1206_s1 = inlined_call_operand.vmem [shape: f32[4,64], index: 1, kind: input, shape index: {}]   ;;  %s1207_s2 = inlined_call_operand.vmem [shape: f32[64,4], index: 2, kind: input, shape index: {}]   ;;  %s1208_s3 = inlined_call_operand.vmem [shape: f32[2,64,1], index: 3, kind: output, shape index: {}]  }
   0x1   :  { %s989_s14 = smov 0   ;;  %s991_s15 = smov 0  }
   0x2   :  { %s993_s16 = smov 0   ;;  %s995_s17 = smov 0  }
   0x3   :  { %s997_s18 = smov 0  }
   0x4 LB: > { %s22_s19 = sadd.s32 1, %s951_s16  ;;  %s25_s20 = sadd.s32 1, %s955_s17  ;;  %s959_s18 = sphi %s997_s18, %s13_s18   ;;  %s955_s17 = sphi %s995_s17, %s1214_s17   ;;  %s951_s16 = sphi %s993_s16, %s1213_s16   ;;  %s947_s15 = sphi %s991_s15, %s1212_s15   ;;  %s943_s14 = sphi %s989_s14, %s1211_s14   ;;  %s939_s13 = sphi %s987_s13, %s1210_s13   ;;  %s935_s12 = sphi %s985_s12, %s1209_s12  }
   0x5   : > { %p23_p0 = scmp.ge.s32.totalorder %s22_s19, 4  ;;  %p41_p1 = scmp.ne.s32.totalorder %s939_s13, %s935_s12 }
   0x6   : > { %p42_p2 = scmp.eq.s32.totalorder %s959_s18, 0  ;;  %s34_s24 = sadd.s32 1, %s939_s13 }
   0x7   : > { %s1216_s19 = smov (%p23_p0, %s22_s19), 0  ;;  %s1218_s20 = smov (!%p23_p0, %s25_s20), %s955_s17 }
   0x8   : > { %p43_p3 = por %p42_p2, %p41_p1  ;;  %p27_p4 = scmp.ge.s32.totalorder %s1218_s20, 2 }
   0x9   : > { %s30_s21 = ssub.s32 %s951_s16, %s1216_s19  ;;  %p728_p6 = scmp.ge.s32.totalorder %s959_s18, 8 }
   0xa   : > { %s1220_s20 = smov (%p27_p4, %s1218_s20), 0 }
   0xb   : > { %s29_s22 = ssub.s32 %s955_s17, %s1220_s20  ;;  %141 = sbr.rel (%p728_p6) target bundleno = 31 (0x1f), region = 24 }
   0xc   : > { %s31_s23 = sor.u32 %s30_s21, %s29_s22 }
   0xd   : > { %p32_p5 = scmp.eq.s32.totalorder %s31_s23, 0 }
   0xf   : > { %s1036_s25 = scalar_select %p32_p5, %s939_s13, %s34_s24  }
  0x10   : > { %144 = sbr.rel (!%p43_p3) target bundleno = 31 (0x1f), region = 28  ;;  %s146_s26 = sand.u32 (%p43_p3), 1, %s939_s13  }
  0x11   : > { %s730_s27 = sshll.u32 (%p43_p3), %s951_s16, 1  ;;  %s729_s28 = sshll.u32 (%p43_p3), %s146_s26, 7 }
  0x12   : > { %s731_s29 = sshll.u32 (%p43_p3), %s955_s17, 6  ;;  %s148_s8 = scalar_lea.vmem (%p43_p3), [#allocation2], %s729_s28 }
  0x13   : > { %s151_s30 = sadd.s32 (%p43_p3), %s731_s29, %s730_s27 }
  0x14   : > { %s732_s4 = sshll.u32 (%p43_p3), %s151_s30, 3 }
  0x15   : > { %s1045_s7 = scalar_lea.vmem %s1205_s0, %s732_s4 }
  0x16   : > { %v166_v0 = vld [vmem:[%s1045_s7] sm:$0xff]  ;;  %v168_v1 = vld [vmem:[%s1045_s7 + $0x8] sm:$0xff] }
  0x17   : > { %v170_v2 = vld [vmem:[%s1045_s7 + $0x40] sm:$0xff]  ;;  %167 = vst [vmem:[%s148_s8] sm:$0xff] %v166_v0  ;;  %169 = vst [vmem:[%s148_s8 + $0x8] sm:$0xff] %v168_v1  ;;  %v172_v3 = vld [vmem:[%s1045_s7 + $0x48] sm:$0xff] }
  0x18   : > { %171 = vst [vmem:[%s148_s8 + $0x10] sm:$0xff] %v170_v2  ;;  %v174_v4 = vld [vmem:[%s1045_s7 + $0x80] sm:$0xff]  ;;  %v176_v5 = vld [vmem:[%s1045_s7 + $0x88] sm:$0xff]  ;;  %173 = vst [vmem:[%s148_s8 + $0x18] sm:$0xff] %v172_v3 }
  0x19   : > { %175 = vst [vmem:[%s148_s8 + $0x20] sm:$0xff] %v174_v4  ;;  %177 = vst [vmem:[%s148_s8 + $0x28] sm:$0xff] %v176_v5  ;;  %v178_v6 = vld [vmem:[%s1045_s7 + $0xc0] sm:$0xff]  ;;  %v180_v7 = vld [vmem:[%s1045_s7 + $0xc8] sm:$0xff] }
  0x1a   : > { %v182_v8 = vld [vmem:[%s1045_s7 + $0x100] sm:$0xff]  ;;  %179 = vst [vmem:[%s148_s8 + $0x30] sm:$0xff] %v178_v6  ;;  %181 = vst [vmem:[%s148_s8 + $0x38] sm:$0xff] %v180_v7  ;;  %v184_v9 = vld [vmem:[%s1045_s7 + $0x108] sm:$0xff] }
  0x1b   : > { %183 = vst [vmem:[%s148_s8 + $0x40] sm:$0xff] %v182_v8  ;;  %v186_v10 = vld [vmem:[%s1045_s7 + $0x140] sm:$0xff]  ;;  %v188_v11 = vld [vmem:[%s1045_s7 + $0x148] sm:$0xff]  ;;  %185 = vst [vmem:[%s148_s8 + $0x48] sm:$0xff] %v184_v9 }
  0x1c   : > { %187 = vst [vmem:[%s148_s8 + $0x50] sm:$0xff] %v186_v10  ;;  %189 = vst [vmem:[%s148_s8 + $0x58] sm:$0xff] %v188_v11  ;;  %v190_v12 = vld [vmem:[%s1045_s7 + $0x180] sm:$0xff]  ;;  %v192_v13 = vld [vmem:[%s1045_s7 + $0x188] sm:$0xff] }
  0x1d   : > { %v194_v14 = vld [vmem:[%s1045_s7 + $0x1c0] sm:$0xff]  ;;  %191 = vst [vmem:[%s148_s8 + $0x60] sm:$0xff] %v190_v12  ;;  %193 = vst [vmem:[%s148_s8 + $0x68] sm:$0xff] %v192_v13  ;;  %v196_v15 = vld [vmem:[%s1045_s7 + $0x1c8] sm:$0xff] }
  0x1e   : > { %195 = vst [vmem:[%s148_s8 + $0x70] sm:$0xff] %v194_v14  ;;  %197 = vst [vmem:[%s148_s8 + $0x78] sm:$0xff] %v196_v15 }
  0x1f PF: > { %p733_p7 = scmp.ge.s32.totalorder %s959_s18, 1  ;;  %p202_p8 = scmp.lt.s32.totalorder %s959_s18, 9 }
  0x21   : > { %p203_p9 = pnand %p733_p7, %p202_p8 }
  0x22   : > { %s209_s9 = sand.u32 (!%p203_p9), 1, %s935_s12   ;;  %p233_p10 = scmp.lt.s32.totalorder (!%p203_p9), %s947_s15, 1 }
  0x23   : > { %206 = sbr.rel (%p203_p9) target bundleno = 793 (0x319), region = 51  ;;  %s734_s10 = sshll.u32 (!%p203_p9), %s209_s9, 7 }
  0x24   : > { %s1073_s24 = scalar_lea.vmem (!%p203_p9), [#allocation2], %s734_s10  ;;  %p737_p11 = scmp.ne.s32.totalorder (!%p203_p9), %s943_s14, 0 }
  0x28   : > { %s1222_s15 = smov (!%p233_p10, %s947_s15), 1  ;;  %241 = sbr.rel (%p737_p11) target bundleno = 50 (0x32), region = 59 }
  0x29   : > { %s759_s11 = sshll.u32 %s1222_s15, 6 }
  0x2a   : > { %s1071_s23 = scalar_lea.vmem %s1208_s3, %s759_s11 }
  0x2d   : > { %vm242_vm0 = vcmask 7168   ;;  %v961_v16 = vmov 0.0  }
  0x2e   : > { %243 = vst.msk [vmem:[%s1071_s23] sm:$0xff] %vm242_vm0, %v961_v16  ;;  %244 = vst.msk [vmem:[%s1071_s23 + $0x8] sm:$0xff] %vm242_vm0, %v961_v16 }
  0x2f   : > { %245 = vst.msk [vmem:[%s1071_s23 + $0x10] sm:$0xff] %vm242_vm0, %v961_v16  ;;  %246 = vst.msk [vmem:[%s1071_s23 + $0x18] sm:$0xff] %vm242_vm0, %v961_v16 }
  0x30   : > { %247 = vst.msk [vmem:[%s1071_s23 + $0x20] sm:$0xff] %vm242_vm0, %v961_v16  ;;  %248 = vst.msk [vmem:[%s1071_s23 + $0x28] sm:$0xff] %vm242_vm0, %v961_v16 }
  0x31   : > { %249 = vst.msk [vmem:[%s1071_s23 + $0x30] sm:$0xff] %vm242_vm0, %v961_v16  ;;  %250 = vst.msk [vmem:[%s1071_s23 + $0x38] sm:$0xff] %vm242_vm0, %v961_v16 }
  0x32 PF: > { %v263_v17 = vld [vmem:[%s1073_s24 + $0x20] sm:$0xff]  ;;  %v264_v18 = vld [vmem:[%s1073_s24 + $0x28] sm:$0xff]  ;;  %v265_v22 = vld [vmem:[%s1073_s24 + $0x30] sm:$0xff]  ;;  %vm307_vm1 = vcmask 7168   ;;  %p738_p12 = scmp.ne.s32.totalorder %s943_s14, 3 }
  0x33   : > { %v259_v19 = vld [vmem:[%s1073_s24] sm:$0xff]  ;;  %v281_v20 = vadd.f32 %v264_v18, %v263_v17  ;;  %v260_v21 = vld [vmem:[%s1073_s24 + $0x8] sm:$0xff]  ;;  %v266_v23 = vld [vmem:[%s1073_s24 + $0x38] sm:$0xff] }
  0x34   : > { %v275_v24 = vadd.f32 %v260_v21, %v259_v19  ;;  %v261_v25 = vld [vmem:[%s1073_s24 + $0x10] sm:$0xff]  ;;  %v262_v26 = vld [vmem:[%s1073_s24 + $0x18] sm:$0xff]  ;;  %v284_v27 = vadd.f32 %v266_v23, %v265_v22  ;;  %v267_v31 = vld [vmem:[%s1073_s24 + $0x40] sm:$0xff] }
  0x35   : > { %282 = vadd.xlane.f32.xlu1 %v281_v20  ;;  %v278_v28 = vadd.f32 %v262_v26, %v261_v25  ;;  %v269_v29 = vld [vmem:[%s1073_s24 + $0x50] sm:$0xff]  ;;  %v270_v30 = vld [vmem:[%s1073_s24 + $0x58] sm:$0xff]  ;;  %v268_v32 = vld [vmem:[%s1073_s24 + $0x48] sm:$0xff] }
  0x36   : > { %276 = vadd.xlane.f32.xlu0 %v275_v24  ;;  %v290_v33 = vadd.f32 %v270_v30, %v269_v29  ;;  %v287_v34 = vadd.f32 %v268_v32, %v267_v31  ;;  %v273_v35 = vld [vmem:[%s1073_s24 + $0x70] sm:$0xff]  ;;  %v274_v36 = vld [vmem:[%s1073_s24 + $0x78] sm:$0xff]  ;;  %v271_v37 = vld [vmem:[%s1073_s24 + $0x60] sm:$0xff] }
  0x37   : > { %v272_v38 = vld [vmem:[%s1073_s24 + $0x68] sm:$0xff]  ;;  %v296_v39 = vadd.f32 %v274_v36, %v273_v35  ;;  %v253_v41 = vld [vmem:[%s1071_s23 + $0x10] sm:$0xff]  ;;  %v251_v42 = vld [vmem:[%s1071_s23] sm:$0xff] }
  0x38   : > { %v293_v40 = vadd.f32 %v272_v38, %v271_v37  ;;  %v254_v47 = vld [vmem:[%s1071_s23 + $0x18] sm:$0xff]  ;;  %v252_v48 = vld [vmem:[%s1071_s23 + $0x8] sm:$0xff]  ;;  %v255_v54 = vld [vmem:[%s1071_s23 + $0x20] sm:$0xff] }
  0x39   : > { %285 = vadd.xlane.f32.xlu1 %v284_v27  ;;  %v256_v53 = vld [vmem:[%s1071_s23 + $0x28] sm:$0xff]  ;;  %v258_v59 = vld [vmem:[%s1071_s23 + $0x38] sm:$0xff]  ;;  %v257_v60 = vld [vmem:[%s1071_s23 + $0x30] sm:$0xff] }
  0x3a   : > { %279 = vadd.xlane.f32.xlu0 %v278_v28 }
  0x3d   : > { %291 = vadd.xlane.f32.xlu1 %v290_v33 }
  0x3e   : > { %288 = vadd.xlane.f32.xlu0 %v287_v34 }
  0x41   : > { %297 = vadd.xlane.f32.xlu1 %v296_v39 }
  0x42   : > { %294 = vadd.xlane.f32.xlu0 %v293_v40 }
  0xbe   : > { %v283_v43 = vpop.xlane.xlu1 %282 }
  0xbf   : > { %v301_v44 = vadd.f32 %v283_v43, %v253_v41  ;;  %v277_v45 = vpop.xlane.xlu0 %276 }
  0xc0   : > { %v299_v46 = vadd.f32 %v277_v45, %v251_v42 }
  0xc1   : > { %310 = vst.msk [vmem:[%s1071_s23 + $0x10] sm:$0xff] %vm307_vm1, %v301_v44 }
  0xc2   : > { %308 = vst.msk [vmem:[%s1071_s23] sm:$0xff] %vm307_vm1, %v299_v46  ;;  %v286_v49 = vpop.xlane.xlu1 %285 }
  0xc3   : > { %v302_v50 = vadd.f32 %v286_v49, %v254_v47  ;;  %v280_v51 = vpop.xlane.xlu0 %279 }
  0xc4   : > { %v300_v52 = vadd.f32 %v280_v51, %v252_v48 }
  0xc5   : > { %311 = vst.msk [vmem:[%s1071_s23 + $0x18] sm:$0xff] %vm307_vm1, %v302_v50 }
  0xc6   : > { %309 = vst.msk [vmem:[%s1071_s23 + $0x8] sm:$0xff] %vm307_vm1, %v300_v52  ;;  %v292_v55 = vpop.xlane.xlu1 %291 }
  0xc7   : > { %v304_v56 = vadd.f32 %v292_v55, %v256_v53  ;;  %v289_v57 = vpop.xlane.xlu0 %288 }
  0xc8   : > { %v303_v58 = vadd.f32 %v289_v57, %v255_v54 }
  0xc9   : > { %313 = vst.msk [vmem:[%s1071_s23 + $0x28] sm:$0xff] %vm307_vm1, %v304_v56 }
  0xca   : > { %312 = vst.msk [vmem:[%s1071_s23 + $0x20] sm:$0xff] %vm307_vm1, %v303_v58  ;;  %v298_v61 = vpop.xlane.xlu1 %297  ;;  %319 = sbr.rel (%p738_p12) target bundleno = 793 (0x319), region = 63 }
  0xcb   : > { %v306_v62 = vadd.f32 %v298_v61, %v258_v59  ;;  %v295_v63 = vpop.xlane.xlu0 %294 }
  0xcc   : > { %v305_v0 = vadd.f32 %v295_v63, %v257_v60 }
  0xcd   : > { %315 = vst.msk [vmem:[%s1071_s23 + $0x38] sm:$0xff] %vm307_vm1, %v306_v62 }
  0xce   : > { %314 = vst.msk [vmem:[%s1071_s23 + $0x30] sm:$0xff] %vm307_vm1, %v305_v0 }
  0xcf   : > { %v962_v4 = vmov 0   ;;  %v963_v8 = vmov 0.0   ;;  %v323_v11 = vld [vmem:[%s1071_s23 + $0x18] sm:$0xff]  ;;  %v322_v12 = vld [vmem:[%s1071_s23 + $0x10] sm:$0xff]  ;;  %v321_v15 = vld [vmem:[%s1071_s23 + $0x8] sm:$0xff]  ;;  %vm964_vm2 = vmmov 0  }
  0xd0   : > { %v325_v2 = vld [vmem:[%s1071_s23 + $0x28] sm:$0xff]  ;;  %872 = vset.pattern.permute.xlu1 %v962_v4  ;;  %871 = vset.pattern.permute.xlu0 %v962_v4  ;;  %v331_v13 = vmul.f32 0.0009765625, %v323_v11  ;;  %v330_v14 = vmul.f32 0.0009765625, %v322_v12  ;;  %v320_v16 = vld [vmem:[%s1071_s23] sm:$0xff]  ;;  %v329_v17 = vmul.f32 0.0009765625, %v321_v15  ;;  %vm377_vm3 = vcmask 523264  }
  0xd1   : > { %v333_v6 = vmul.f32 0.0009765625, %v325_v2  ;;  %v324_v7 = vld [vmem:[%s1071_s23 + $0x20] sm:$0xff]  ;;  %778 = vmatprep.subr.mxu0 %v963_v8  ;;  %v328_v18 = vmul.f32 0.0009765625, %v320_v16  ;;  %794 = vmatprep.mubr.msk.f32.mxu0 %vm964_vm2, %v963_v8  ;;  %vm460_vm4 = vcmask 31744   ;;  %vm485_vm5 = vcmask 1043456   ;;  %v453_v32 = vld [vmem:[%s1207_s2 + $0x8] sm:$0xff] }
  0xd2   : > { %v332_v10 = vmul.f32 0.0009765625, %v324_v7  ;;  %v376_v26 = vld [vmem:[%s1206_s1] sm:$0xf]  ;;  %v454_v33 = vld [vmem:[%s1207_s2 + $0x10] sm:$0xff]  ;;  %v455_v34 = vld [vmem:[%s1207_s2 + $0x18] sm:$0xff] }
  0xd3   : > { %363 = vperm.xlu1 %872, %v333_v6   ;;  %v452_v28 = vld [vmem:[%s1207_s2] sm:$0xff]  ;;  %v457_v36 = vld [vmem:[%s1207_s2 + $0x28] sm:$0xff]  ;;  %v458_v37 = vld [vmem:[%s1207_s2 + $0x30] sm:$0xff] }
  0xd4   : > { %v327_v1 = vld [vmem:[%s1071_s23 + $0x38] sm:$0xff]  ;;  %799 = vmatprep.mubr.msk.f32.mxu1 %vm460_vm4, %v452_v28  ;;  %v456_v35 = vld [vmem:[%s1207_s2 + $0x20] sm:$0xff] }
  0xd5   : > { %v326_v3 = vld [vmem:[%s1071_s23 + $0x30] sm:$0xff]  ;;  %v335_v5 = vmul.f32 0.0009765625, %v327_v1  ;;  %v459_v38 = vld [vmem:[%s1207_s2 + $0x38] sm:$0xff] }
  0xd6   : > { %v334_v9 = vmul.f32 0.0009765625, %v326_v3 }
  0xd7   : > { %373 = vperm.xlu0 %871, %v335_v5   ;;  %358 = vperm.xlu1 %872, %v332_v10  }
  0xdb   : > { %368 = vperm.xlu0 %871, %v334_v9   ;;  %348 = vperm.xlu1 %872, %v330_v14  }
  0xdf   : > { %353 = vperm.xlu0 %871, %v331_v13   ;;  %338 = vperm.xlu1 %872, %v328_v18  }
  0xe3   : > { %343 = vperm.xlu0 %871, %v329_v17  }
 0x14e   : > { %v364_v20 = vpop.permute.xlu1 %363 }
 0x152   : > { %v374_v19 = vpop.permute.xlu0 %373  ;;  %v359_v22 = vpop.permute.xlu1 %358 }
 0x153   : > { %779 = vmatpush3.msra.mxu0 %v374_v19 }
 0x154   : > { %780 = vmatprep.subr.mxu0 %v963_v8 }
 0x156   : > { %v369_v21 = vpop.permute.xlu0 %368  ;;  %v349_v24 = vpop.permute.xlu1 %348 }
 0x157   : > { %781 = vmatpush3.msra.mxu0 %v369_v21 }
 0x158   : > { %782 = vmatprep.subr.mxu0 %v963_v8 }
 0x159   : > { %783 = vmatpush3.msra.mxu0 %v364_v20 }
 0x15a   : > { %784 = vmatprep.subr.mxu0 %v963_v8  ;;  %v354_v23 = vpop.permute.xlu0 %353  ;;  %v339_v27 = vpop.permute.xlu1 %338 }
 0x15b   : > { %785 = vmatpush3.msra.mxu0 %v359_v22 }
 0x15c   : > { %786 = vmatprep.subr.mxu0 %v963_v8 }
 0x15d   : > { %787 = vmatpush3.msra.mxu0 %v354_v23 }
 0x15e   : > { %788 = vmatprep.subr.mxu0 %v963_v8  ;;  %v344_v25 = vpop.permute.xlu0 %343 }
 0x15f   : > { %789 = vmatpush3.msra.mxu0 %v349_v24 }
 0x160   : > { %790 = vmatprep.subr.mxu0 %v963_v8 }
 0x161   : > { %791 = vmatpush3.msra.mxu0 %v344_v25 }
 0x162   : > { %792 = vmatprep.subr.mxu0 %v963_v8 }
 0x163   : > { %793 = vmatpush3.msra.mxu0 %v339_v27 }
 0x164   : > { %795 = vmatmul.mubr.msk.f32.vlgmr.msra.gmra.mxu0 %vm377_vm3, %v376_v26 }
 0x224   : > { %v447_v29 = vpop.f32.mrf.mxu0 }
 0x225   : > { %v451_v30 = vmax.f32 %v447_v29, 0.0 }
 0x226   : > { %v796_v31 = vpop.f32.mrf.mxu0 }
 0x227   : > { %797 = vmatprep.subr.msk.mxu1 %vm485_vm5, %v451_v30 }
 0x228   : > { %798 = vmatpush3.msk.msra.mxu1 %vm485_vm5, %v451_v30 }
 0x229   : > { %800 = vmatmul.mubr.msk.f32.vlgmr.msra.gmra.mxu1 %vm460_vm4, %v453_v32 }
 0x22a   : > { %802 = vmatprep.mubr.msk.f32.mxu1 %vm460_vm4, %v454_v33 }
 0x22d   : > { %803 = vmatmul.mubr.msk.f32.gmra.mxu1 %vm460_vm4, %v455_v34 }
 0x22e   : > { %805 = vmatprep.mubr.msk.f32.mxu1 %vm460_vm4, %v456_v35 }
 0x231   : > { %806 = vmatmul.mubr.msk.f32.gmra.mxu1 %vm460_vm4, %v457_v36 }
 0x232   : > { %808 = vmatprep.mubr.msk.f32.mxu1 %vm460_vm4, %v458_v37 }
 0x235   : > { %809 = vmatmul.mubr.msk.f32.gmra.mxu1 %vm460_vm4, %v459_v38 }
 0x2e9   : > { %v801_v39 = vpop.f32.mrf.mxu1 }
 0x2ea   : > { %v750_v40 = vmul.f32 -1.442695, %v801_v39 }
 0x2eb   : > { %v555_v41 = vpop.f32.mrf.mxu1 }
 0x2ec   : > { %873 = vpow2.f32 %v750_v40  ;;  %v749_v42 = vmul.f32 -1.442695, %v555_v41 }
 0x2ed   : > { %v804_v43 = vpop.f32.mrf.mxu1 }
 0x2ee   : > { %875 = vpow2.f32 %v749_v42  ;;  %v752_v44 = vmul.f32 -1.442695, %v804_v43 }
 0x2ef   : > { %v565_v45 = vpop.f32.mrf.mxu1 }
 0x2f0   : > { %877 = vpow2.f32 %v752_v44  ;;  %v751_v46 = vmul.f32 -1.442695, %v565_v45 }
 0x2f1   : > { %v807_v47 = vpop.f32.mrf.mxu1 }
 0x2f2   : > { %879 = vpow2.f32 %v751_v46  ;;  %v754_v48 = vmul.f32 -1.442695, %v807_v47 }
 0x2f3   : > { %v575_v49 = vpop.f32.mrf.mxu1 }
 0x2f4   : > { %881 = vpow2.f32 %v754_v48  ;;  %v753_v50 = vmul.f32 -1.442695, %v575_v49 }
 0x2f5   : > { %v810_v51 = vpop.f32.mrf.mxu1 }
 0x2f6   : > { %883 = vpow2.f32 %v753_v50  ;;  %v756_v52 = vmul.f32 -1.442695, %v810_v51 }
 0x2f7   : > { %v585_v53 = vpop.f32.mrf.mxu1 }
 0x2f8   : > { %885 = vpow2.f32 %v756_v52  ;;  %v755_v54 = vmul.f32 -1.442695, %v585_v53 }
 0x2f9   : > { %v874_v55 = vpop.eup %873 }
 0x2fa   : > { %v619_v56 = vadd.f32 1.0, %v874_v55  ;;  %887 = vpow2.f32 %v755_v54 }
 0x2fb   : > { %v876_v57 = vpop.eup %875 }
 0x2fc   : > { %889 = vrcp.f32 %v619_v56  ;;  %v618_v58 = vadd.f32 1.0, %v876_v57 }
 0x2fd   : > { %v878_v59 = vpop.eup %877 }
 0x2fe   : > { %891 = vrcp.f32 %v618_v58  ;;  %v621_v60 = vadd.f32 1.0, %v878_v59 }
 0x2ff   : > { %v880_v61 = vpop.eup %879 }
 0x300   : > { %893 = vrcp.f32 %v621_v60  ;;  %v620_v62 = vadd.f32 1.0, %v880_v61 }
 0x301   : > { %v882_v63 = vpop.eup %881 }
 0x302   : > { %895 = vrcp.f32 %v620_v62  ;;  %v623_v0 = vadd.f32 1.0, %v882_v63 }
 0x303   : > { %v884_v1 = vpop.eup %883 }
 0x304   : > { %897 = vrcp.f32 %v623_v0  ;;  %v622_v2 = vadd.f32 1.0, %v884_v1 }
 0x305   : > { %v886_v3 = vpop.eup %885 }
 0x306   : > { %899 = vrcp.f32 %v622_v2  ;;  %v625_v4 = vadd.f32 1.0, %v886_v3 }
 0x307   : > { %v888_v5 = vpop.eup %887 }
 0x308   : > { %901 = vrcp.f32 %v625_v4  ;;  %v624_v6 = vadd.f32 1.0, %v888_v5 }
 0x309   : > { %v890_v7 = vpop.eup %889 }
 0x30a   : > { %643 = vst.msk [vmem:[%s1071_s23 + $0x8] sm:$0xff] %vm307_vm1, %v890_v7  ;;  %903 = vrcp.f32 %v624_v6 }
 0x30b   : > { %v892_v8 = vpop.eup %891 }
 0x30c   : > { %642 = vst.msk [vmem:[%s1071_s23] sm:$0xff] %vm307_vm1, %v892_v8 }
 0x30d   : > { %v894_v9 = vpop.eup %893 }
 0x30e   : > { %645 = vst.msk [vmem:[%s1071_s23 + $0x18] sm:$0xff] %vm307_vm1, %v894_v9 }
 0x30f   : > { %v896_v10 = vpop.eup %895 }
 0x310   : > { %644 = vst.msk [vmem:[%s1071_s23 + $0x10] sm:$0xff] %vm307_vm1, %v896_v10 }
 0x311   : > { %v898_v11 = vpop.eup %897 }
 0x312   : > { %647 = vst.msk [vmem:[%s1071_s23 + $0x28] sm:$0xff] %vm307_vm1, %v898_v11 }
 0x313   : > { %v900_v12 = vpop.eup %899 }
 0x314   : > { %646 = vst.msk [vmem:[%s1071_s23 + $0x20] sm:$0xff] %vm307_vm1, %v900_v12 }
 0x315   : > { %v902_v13 = vpop.eup %901 }
 0x316   : > { %649 = vst.msk [vmem:[%s1071_s23 + $0x38] sm:$0xff] %vm307_vm1, %v902_v13 }
 0x317   : > { %v904_v14 = vpop.eup %903 }
 0x318   : > { %648 = vst.msk [vmem:[%s1071_s23 + $0x30] sm:$0xff] %vm307_vm1, %v904_v14 }
 0x319 PF: > { %s13_s18 = sadd.s32 1, %s959_s18   ;;  %s1209_s12 = smov %s939_s13 }
 0x31a   : > { %p10_p13 = scmp.ge.s32.totalorder %s13_s18, 10   ;;  %s1210_s13 = smov %s1036_s25 }
 0x31b   : > { %s1211_s14 = smov %s951_s16  ;;  %s1212_s15 = smov %s955_s17 }
 0x31c   : > { %s1213_s16 = smov %s1216_s19  ;;  %s1214_s17 = smov %s1220_s20 }
 0x31d   :  { %12 = sbr.rel (!%p10_p13) target bundleno = 4 (0x4), region = 98 }

</bundles_post_ra>
